<compile_context>
chip_gen: v7x
topology: tpu7x:2x2x1
jax: 0.10.0
libtpu: 0.0.40
codegen_flags: <defaults>
</compile_context>

<pallas_src>
import functools

import numpy as np

import jax
import jax.numpy as jnp
from jax import lax
from jax.experimental import pallas as pl
from jax.experimental.pallas import tpu as pltpu

EPS = 1e-5


def _relu_conv_bn_kernel(lhs_ref, rhs_ref, sel_ref, selt_ref, gb_ref, o_ref, *,
                         rows, inv_cnt, mxu_dtype):
    """Fused ReLU -> conv (implicit GEMM) -> batch-stat BN.

    lhs_ref:  (R, Kp)     R = N*Ho padded input rows (pre-ReLU), Kp = KH*Wp*Cin padded to x128
    rhs_ref:  (Kp, L)     banded Toeplitz weights, L = Wo*Cout (zero-padded rows beyond K)
    sel_ref:  (L, Cout)   one-hot: sel[wo*Cout + c, c] = 1   (lane -> channel reduce)
    selt_ref: (Cout, L)   one-hot: selt[c, wo*Cout + c] = 1  (channel -> lane broadcast)
    gb_ref:   (2, Cout)   row 0 = gamma, row 1 = beta
    o_ref:    (R, L)      lane-dense output slab
    """
    # ReLU in f32 (zero pad columns are unaffected: relu(0) == 0, so this equals
    # ReLU-before-pad / ReLU-before-conv).
    x = jnp.maximum(lhs_ref[...].astype(jnp.float32), 0.0)

    # Convolution: ONE MXU matmul, output already in lane-dense slab layout.
    # Only the MXU operands are (optionally) bf16; accumulation stays f32.
    acc = jnp.dot(x.astype(mxu_dtype), rhs_ref[...].astype(mxu_dtype),
                  preferred_element_type=jnp.float32)                        # (R, L) f32

    # --- fused BN-stat epilogue: one selector matmul gives per-channel sum and
    # sum-of-squares together (channel c lives at lanes wo*Cout + c). ---
    stacked = jnp.concatenate([acc, acc * acc], axis=0)                      # (2R, L)
    ch = jnp.dot(stacked, sel_ref[...], preferred_element_type=jnp.float32)  # (2R, Cout)
    sum_c = jnp.sum(ch[:rows], axis=0, keepdims=True)                        # (1, Cout)
    sqsum_c = jnp.sum(ch[rows:], axis=0, keepdims=True)                      # (1, Cout)
    mean_c = sum_c * inv_cnt
    var_c = sqsum_c * inv_cnt - mean_c * mean_c        # uncentered, fine in f32 here

    # Fold BN affine + centering into per-channel scale/shift, broadcast back to
    # slab lanes with one tiny matmul, then a single mul+add pass over the slab.
    gamma = gb_ref[0:1, :].astype(jnp.float32)
    beta = gb_ref[1:2, :].astype(jnp.float32)
    scale_c = gamma * lax.rsqrt(var_c + EPS)                                 # (1, Cout)
    shift_c = beta - mean_c * scale_c                                        # (1, Cout)
    sb = jnp.concatenate([scale_c, shift_c], axis=0)                         # (2, Cout)
    sb_t = jnp.dot(sb, selt_ref[...], preferred_element_type=jnp.float32)    # (2, L)

    o_ref[...] = (acc * sb_t[0:1, :] + sb_t[1:2, :]).astype(o_ref.dtype)


def make_relu_conv_bn(weight_oihw, gamma, beta, *, N, H, W, stride=1, padding=1,
                      dilation=1, mxu_dtype=jnp.float32):
    """Builds all weight-dependent constants ONCE and returns forward(x_nchw)."""
    assert dilation == 1, "dilation != 1 not used by this config"

    w_np = np.asarray(weight_oihw, dtype=np.float32)
    Cout, Cin, KH, KW = w_np.shape
    Ho = (H + 2 * padding - KH) // stride + 1
    Wo = (W + 2 * padding - KW) // stride + 1
    Wp = W + 2 * padding
    R = N * Ho
    L = Wo * Cout
    K_real = KH * Wp * Cin
    K_pad = -(-K_real // 128) * 128          # 216 -> 256: unmasked vld, clean MXU K

    # ---- hoisted, per-weight constants (numpy; built once, not per forward) -----
    # Banded block-Toeplitz RHS:
    #   rhs[kh*Wp*Cin + w*Cin + ci, wo*Cout + co] = W[co, ci, kh, w - wo*stride]
    #   when 0 <= w - wo*stride < KW, else 0.
    w_hwio = np.transpose(w_np, (2, 3, 1, 0))                    # (KH, KW, Cin, Cout)
    rhs = np.zeros((KH, Wp, Cin, Wo, Cout), np.float32)
    for kh in range(KH):
        for wo in range(Wo):
            w0 = wo * stride
            rhs[kh, w0:w0 + KW, :, wo, :] = w_hwio[kh]
    rhs_flat = np.zeros((K_pad, L), np.float32)
    rhs_flat[:K_real] = rhs.reshape(K_real, L)

    # One-hot selectors mapping slab lanes (wo*Cout + c) <-> channels c.
    eye = np.eye(Cout, dtype=np.float32)
    sel = np.tile(eye, (Wo, 1))                                  # (L, Cout)
    selt = np.tile(eye, (1, Wo))                                 # (Cout, L)

    gb = np.stack([np.asarray(gamma, np.float32).reshape(Cout),
                   np.asarray(beta, np.float32).reshape(Cout)], axis=0)  # (2, Cout)

    rhs_dtype = jnp.bfloat16 if mxu_dtype == jnp.bfloat16 else jnp.float32
    rhs_dev = jnp.asarray(rhs_flat, dtype=rhs_dtype)
    sel_dev = jnp.asarray(sel)
    selt_dev = jnp.asarray(selt)
    gb_dev = jnp.asarray(gb)

    kernel = functools.partial(_relu_conv_bn_kernel, rows=R,
                               inv_cnt=1.0 / float(N * Ho * Wo),
                               mxu_dtype=mxu_dtype)
    vmem = pl.BlockSpec(memory_space=pltpu.MemorySpace.VMEM)
    call = pl.pallas_call(
        kernel,
        out_shape=jax.ShapeDtypeStruct((R, L), jnp.float32),
        in_specs=[vmem] * 5,
        out_specs=vmem,
    )  # gridless single program: ~0.2 MB total VMEM, far under every generation's limit

    @jax.jit
    def forward(x_nchw):
        # Wrapper-side layout glue (tiny tensors; not the hot path at this size).
        x_nhwc = jnp.transpose(x_nchw, (0, 2, 3, 1))
        x_pad = jnp.pad(x_nhwc, ((0, 0), (padding, padding), (padding, padding), (0, 0)))
        # LHS: one row per output row = the KH padded input rows it reads, flattened.
        rows_l = [
            x_pad[:, kh:kh + (Ho - 1) * stride + 1:stride].reshape(N, Ho, Wp * Cin)
            for kh in range(KH)
        ]
        lhs = jnp.concatenate(rows_l, axis=-1).reshape(R, K_real)
        lhs = jnp.pad(lhs, ((0, 0), (0, K_pad - K_real)))
        out_slab = call(lhs, rhs_dev, sel_dev, selt_dev, gb_dev)
        # slab (N*Ho, Wo*Cout) -> NHWC -> NCHW to match the PyTorch module.
        return jnp.transpose(out_slab.reshape(N, Ho, Wo, Cout), (0, 3, 1, 2))

    return forward


def _reference(x_nchw, weight_oihw, gamma, beta, *, stride=1, padding=1):
    """Pure-JAX reference (ReLU -> conv -> batch-stat BN), NCHW."""
    xr = jnp.maximum(x_nchw, 0.0)
    z = lax.conv_general_dilated(
        xr, weight_oihw, window_strides=(stride, stride),
        padding=((padding, padding), (padding, padding)),
        dimension_numbers=("NCHW", "OIHW", "NCHW"))
    mean = jnp.mean(z, axis=(0, 2, 3), keepdims=True)
    var = jnp.mean((z - mean) ** 2, axis=(0, 2, 3), keepdims=True)
    return (z - mean) * lax.rsqrt(var + EPS) * gamma.reshape(1, -1, 1, 1) \
        + beta.reshape(1, -1, 1, 1)


if __name__ == "__main__":
    # Config: C_in=4, C_out=8, kernel_size=3, stride=1, padding=1, dilation=1,
    # affine=True, BatchNorm constructed with track_running_stats=False.
    key = jax.random.PRNGKey(0)
    kx, kw = jax.random.split(key)

    N, C_in, H, W = 2, 4, 16, 16
    C_out, K = 8, 3

    x = jax.random.normal(kx, (N, C_in, H, W), dtype=jnp.float32)
    weight = 0.1 * jax.random.normal(kw, (C_out, C_in, K, K), dtype=jnp.float32)
    gamma = jnp.ones((C_out,), jnp.float32)   # PyTorch BN affine init
    beta = jnp.zeros((C_out,), jnp.float32)

    ref = _reference(x, weight, gamma, beta, stride=1, padding=1)

    # Default f32 MXU path: holds the tight 1e-3 check.
    fwd = make_relu_conv_bn(weight, gamma, beta, N=N, H=H, W=W,
                            stride=1, padding=1)
    out = jax.block_until_ready(fwd(x))
    assert out.shape == (N, C_out, H, W)
    assert jnp.allclose(out, ref, atol=1e-3, rtol=1e-3), \
        float(jnp.max(jnp.abs(out - ref)))

    # bf16 MXU-operand path (v6e/v7x recommendation); BN amplifies conv error by
    # ~1/std, so validate with a correspondingly looser tolerance.
    fwd_bf16 = make_relu_conv_bn(weight, gamma, beta, N=N, H=H, W=W,
                                 stride=1, padding=1, mxu_dtype=jnp.bfloat16)
    out_bf16 = jax.block_until_ready(fwd_bf16(x))
    assert jnp.allclose(out_bf16, ref, atol=2.5e-2, rtol=2.5e-2), \
        float(jnp.max(jnp.abs(out_bf16 - ref)))

    print("KERNEL_OK")
</pallas_src>

<mosaic_0001>
module attributes {stable_mosaic.version = 11 : i64} {
  func.func @_relu_conv_bn_kernel(%arg0: memref<32x256xf32, #tpu.memory_space<vmem>>, %arg1: memref<256x128xf32, #tpu.memory_space<vmem>>, %arg2: memref<128x8xf32, #tpu.memory_space<vmem>>, %arg3: memref<8x128xf32, #tpu.memory_space<vmem>>, %arg4: memref<2x8xf32, #tpu.memory_space<vmem>>, %arg5: memref<32x128xf32, #tpu.memory_space<vmem>>) attributes {dimension_semantics = [], scalar_prefetch = 0 : i64, scratch_operands = 0 : i64, tpu.core_type = #tpu.core_type<tc>} {
    %c0 = arith.constant 0 : index
    %c0_0 = arith.constant 0 : index
    %0 = vector.load %arg0[%c0, %c0_0] : memref<32x256xf32, #tpu.memory_space<vmem>>, vector<32x256xf32>
    %cst = arith.constant 0.000000e+00 : f32
    %1 = vector.broadcast %cst : f32 to vector<32x256xf32>
    %2 = arith.maximumf %0, %1 : vector<32x256xf32>
    %c0_1 = arith.constant 0 : index
    %c0_2 = arith.constant 0 : index
    %3 = vector.load %arg1[%c0_1, %c0_2] : memref<256x128xf32, #tpu.memory_space<vmem>>, vector<256x128xf32>
    %cst_3 = arith.constant dense<0.000000e+00> : vector<32x128xf32>
    %4 = tpu.matmul %2, %3, %cst_3 {dimension_numbers = #tpu.dot_dimension_numbers<[1], [0], [0], [1], [0, 0, 1, 1], [], []>} : vector<32x256xf32>, vector<256x128xf32>, vector<32x128xf32> -> vector<32x128xf32>
    %5 = arith.mulf %4, %4 : vector<32x128xf32>
    %6 = tpu.concatenate %4, %5 in 0 : vector<32x128xf32>, vector<32x128xf32> -> vector<64x128xf32>
    %c0_4 = arith.constant 0 : index
    %c0_5 = arith.constant 0 : index
    %7 = vector.load %arg2[%c0_4, %c0_5] : memref<128x8xf32, #tpu.memory_space<vmem>>, vector<128x8xf32>
    %cst_6 = arith.constant dense<0.000000e+00> : vector<64x8xf32>
    %8 = tpu.matmul %6, %7, %cst_6 {dimension_numbers = #tpu.dot_dimension_numbers<[1], [0], [0], [1], [0, 0, 1, 1], [], []>} : vector<64x128xf32>, vector<128x8xf32>, vector<64x8xf32> -> vector<64x8xf32>
    %9 = vector.extract_strided_slice %8 {offsets = [0, 0], sizes = [32, 8], strides = [1, 1]} : vector<64x8xf32> to vector<32x8xf32>
    %cst_7 = arith.constant dense<0.000000e+00> : vector<8xf32>
    %10 = vector.multi_reduction <add>, %9, %cst_7 [0] : vector<32x8xf32> to vector<8xf32>
    %11 = vector.shape_cast %10 : vector<8xf32> to vector<1x8xf32>
    %12 = vector.extract_strided_slice %8 {offsets = [32, 0], sizes = [32, 8], strides = [1, 1]} : vector<64x8xf32> to vector<32x8xf32>
    %cst_8 = arith.constant dense<0.000000e+00> : vector<8xf32>
    %13 = vector.multi_reduction <add>, %12, %cst_8 [0] : vector<32x8xf32> to vector<8xf32>
    %14 = vector.shape_cast %13 : vector<8xf32> to vector<1x8xf32>
    %cst_9 = arith.constant 0.001953125 : f32
    %15 = vector.broadcast %cst_9 : f32 to vector<1x8xf32>
    %16 = arith.mulf %11, %15 : vector<1x8xf32>
    %cst_10 = arith.constant 0.001953125 : f32
    %17 = vector.broadcast %cst_10 : f32 to vector<1x8xf32>
    %18 = arith.mulf %14, %17 : vector<1x8xf32>
    %19 = arith.mulf %16, %16 : vector<1x8xf32>
    %20 = arith.subf %18, %19 : vector<1x8xf32>
    %c0_11 = arith.constant 0 : index
    %c0_12 = arith.constant 0 : index
    %21 = vector.load %arg4[%c0_11, %c0_12] : memref<2x8xf32, #tpu.memory_space<vmem>>, vector<1x8xf32>
    %c1 = arith.constant 1 : index
    %c0_13 = arith.constant 0 : index
    %22 = vector.load %arg4[%c1, %c0_13] : memref<2x8xf32, #tpu.memory_space<vmem>>, vector<1x8xf32>
    %cst_14 = arith.constant 9.99999974E-6 : f32
    %23 = vector.broadcast %cst_14 : f32 to vector<1x8xf32>
    %24 = arith.addf %20, %23 : vector<1x8xf32>
    %25 = math.rsqrt %24 : vector<1x8xf32>
    %26 = arith.mulf %21, %25 : vector<1x8xf32>
    %27 = arith.mulf %16, %26 : vector<1x8xf32>
    %28 = arith.subf %22, %27 : vector<1x8xf32>
    %29 = tpu.concatenate %26, %28 in 0 : vector<1x8xf32>, vector<1x8xf32> -> vector<2x8xf32>
    %c0_15 = arith.constant 0 : index
    %c0_16 = arith.constant 0 : index
    %30 = vector.load %arg3[%c0_15, %c0_16] : memref<8x128xf32, #tpu.memory_space<vmem>>, vector<8x128xf32>
    %cst_17 = arith.constant dense<0.000000e+00> : vector<2x128xf32>
    %31 = tpu.matmul %29, %30, %cst_17 {dimension_numbers = #tpu.dot_dimension_numbers<[1], [0], [0], [1], [0, 0, 1, 1], [], []>} : vector<2x8xf32>, vector<8x128xf32>, vector<2x128xf32> -> vector<2x128xf32>
    %32 = vector.extract_strided_slice %31 {offsets = [0, 0], sizes = [1, 128], strides = [1, 1]} : vector<2x128xf32> to vector<1x128xf32>
    %33 = vector.broadcast %32 : vector<1x128xf32> to vector<32x128xf32>
    %34 = arith.mulf %4, %33 : vector<32x128xf32>
    %35 = vector.extract_strided_slice %31 {offsets = [1, 0], sizes = [1, 128], strides = [1, 1]} : vector<2x128xf32> to vector<1x128xf32>
    %36 = vector.broadcast %35 : vector<1x128xf32> to vector<32x128xf32>
    %37 = arith.addf %34, %36 : vector<32x128xf32>
    %c0_18 = arith.constant 0 : index
    %c0_19 = arith.constant 0 : index
    %38 = vector.load %arg5[%c0_18, %c0_19] : memref<32x128xf32, #tpu.memory_space<vmem>>, vector<32x128xf32>
    tpu.vector_store %arg5[%c0_18, %c0_19], %37 {strides = array<i32>} : memref<32x128xf32, #tpu.memory_space<vmem>>, vector<32x128xf32>,
    return
  }
}

</mosaic_0001>

<bundles_post_ra>
// kernel: forward.1
= control target key start
LH: loop header
LB: loop body
LE: loop exit
PB: predicated region body
PF: predicated region fallthrough
CT: control target
= control target key end

     0   :  { %vm608_vm0 = vmmov 0   ;;  %vm278_vm1 = vcmask 64512   ;;  %vm319_vm2 = vcmask 1040384   ;;  %s861_s1 = inlined_call_operand.vmem [shape: f32[256,128], index: 1, kind: input, shape index: {}]   ;;  %s862_s0 = inlined_call_operand.vmem [shape: f32[32,256], index: 0, kind: input, shape index: {}]   ;;  %s863_s2 = inlined_call_operand.vmem [shape: f32[128,8], index: 2, kind: input, shape index: {}]   ;;  %s864_s3 = inlined_call_operand.vmem [shape: f32[8,128], index: 3, kind: input, shape index: {}]   ;;  %s865_s4 = inlined_call_operand.vmem [shape: f32[2,8], index: 4, kind: input, shape index: {}]   ;;  %s866_s5 = inlined_call_operand.vmem [shape: f32[32,128], index: 5, kind: output, shape index: {}]  }
   0x1   :  { %v52_v0 = vld [vmem:[%s861_s1 + $0x80] sm:$0xff]  ;;  %v53_v1 = vld [vmem:[%s861_s1 + $0x88] sm:$0xff]  ;;  %v54_v5 = vld [vmem:[%s861_s1 + $0x90] sm:$0xff] }
   0x2   :  { %v36_v2 = vld [vmem:[%s861_s1] sm:$0xff]  ;;  %v539_v3 = vpack.c.bf16 %v53_v1, %v52_v0  ;;  %v37_v4 = vld [vmem:[%s861_s1 + $0x8] sm:$0xff]  ;;  %v55_v6 = vld [vmem:[%s861_s1 + $0x98] sm:$0xff] }
   0x3   :  { %v541_v7 = vpack.c.bf16 %v37_v4, %v36_v2  ;;  %v543_v8 = vpack.c.bf16 %v55_v6, %v54_v5  ;;  %v38_v9 = vld [vmem:[%s861_s1 + $0x10] sm:$0xff]  ;;  %v39_v10 = vld [vmem:[%s861_s1 + $0x18] sm:$0xff]  ;;  %v56_v11 = vld [vmem:[%s861_s1 + $0xa0] sm:$0xff] }
   0x4   :  { %540 = vmatprep.subr.bf16.mxu0 %v539_v3  ;;  %v57_v12 = vld [vmem:[%s861_s1 + $0xa8] sm:$0xff]  ;;  %v545_v13 = vpack.c.bf16 %v39_v10, %v38_v9  ;;  %v40_v15 = vld [vmem:[%s861_s1 + $0x20] sm:$0xff]  ;;  %v58_v17 = vld [vmem:[%s861_s1 + $0xb0] sm:$0xff] }
   0x5   :  { %542 = vmatpush3.bf16.msra.mxu0 %v541_v7  ;;  %v547_v14 = vpack.c.bf16 %v57_v12, %v56_v11  ;;  %v41_v16 = vld [vmem:[%s861_s1 + $0x28] sm:$0xff]  ;;  %v59_v18 = vld [vmem:[%s861_s1 + $0xb8] sm:$0xff]  ;;  %v42_v21 = vld [vmem:[%s861_s1 + $0x30] sm:$0xff] }
   0x6   :  { %544 = vmatprep.subr.bf16.mxu0 %v543_v8  ;;  %v549_v19 = vpack.c.bf16 %v41_v16, %v40_v15  ;;  %v551_v20 = vpack.c.bf16 %v59_v18, %v58_v17  ;;  %v43_v22 = vld [vmem:[%s861_s1 + $0x38] sm:$0xff]  ;;  %v60_v23 = vld [vmem:[%s861_s1 + $0xc0] sm:$0xff]  ;;  %v61_v24 = vld [vmem:[%s861_s1 + $0xc8] sm:$0xff] }
   0x7   :  { %v21_v25 = vld [vmem:[%s862_s0 + $0x8] sm:$0xff]  ;;  %v553_v27 = vpack.c.bf16 %v43_v22, %v42_v21  ;;  %v44_v28 = vld [vmem:[%s861_s1 + $0x40] sm:$0xff]  ;;  %v555_v30 = vpack.c.bf16 %v61_v24, %v60_v23  ;;  %v62_v31 = vld [vmem:[%s861_s1 + $0xd0] sm:$0xff] }
   0x8   :  { %v29_v26 = vmax.f32 %v21_v25, 0.0  ;;  %v45_v29 = vld [vmem:[%s861_s1 + $0x48] sm:$0xff]  ;;  %v157_v32 = vld [vmem:[%s863_s2] sm:$0xff]  ;;  %v63_v34 = vld [vmem:[%s861_s1 + $0xd8] sm:$0xff] }
   0x9   :  { %546 = vmatpush3.bf16.msra.mxu0 %v545_v13  ;;  %v158_v33 = vld [vmem:[%s863_s2 + $0x8] sm:$0xff]  ;;  %v159_v36 = vld [vmem:[%s863_s2 + $0x10] sm:$0xff]  ;;  %v160_v37 = vld [vmem:[%s863_s2 + $0x18] sm:$0xff]  ;;  %v557_v41 = vpack.c.bf16 %v45_v29, %v44_v28  ;;  %v559_v42 = vpack.c.bf16 %v63_v34, %v62_v31 }
   0xa   :  { %548 = vmatprep.subr.bf16.mxu0 %v547_v14  ;;  %132 = vmatprep.mubr.f32.mxu0 %v29_v26  ;;  %v571_v35 = vpack.c.bf16 %v158_v33, %v157_v32  ;;  %v575_v38 = vpack.c.bf16 %v160_v37, %v159_v36  ;;  %v161_v39 = vld [vmem:[%s863_s2 + $0x20] sm:$0xff]  ;;  %v162_v40 = vld [vmem:[%s863_s2 + $0x28] sm:$0xff]  ;;  %v46_v43 = vld [vmem:[%s861_s1 + $0x50] sm:$0xff] }
   0xb   :  { %v47_v44 = vld [vmem:[%s861_s1 + $0x58] sm:$0xff]  ;;  %v64_v45 = vld [vmem:[%s861_s1 + $0xe0] sm:$0xff]  ;;  %v65_v46 = vld [vmem:[%s861_s1 + $0xe8] sm:$0xff]  ;;  %v579_v47 = vpack.c.bf16 %v162_v40, %v161_v39  ;;  %v607_v40 = vmov 0.0  }
   0xc   :  { %572 = vmatprep.subr.bf16.mxu1 %v571_v35  ;;  %v163_v48 = vld [vmem:[%s863_s2 + $0x30] sm:$0xff]  ;;  %v164_v49 = vld [vmem:[%s863_s2 + $0x38] sm:$0xff]  ;;  %v561_v50 = vpack.c.bf16 %v47_v44, %v46_v43  ;;  %v563_v51 = vpack.c.bf16 %v65_v46, %v64_v45  ;;  %v48_v52 = vld [vmem:[%s861_s1 + $0x60] sm:$0xff] }
   0xd   :  { %550 = vmatpush3.bf16.msra.mxu0 %v549_v19  ;;  %574 = vmatpush3.bf16.msra.mxu1 %v571_v35  ;;  %v49_v53 = vld [vmem:[%s861_s1 + $0x68] sm:$0xff]  ;;  %v66_v54 = vld [vmem:[%s861_s1 + $0xf0] sm:$0xff]  ;;  %v67_v55 = vld [vmem:[%s861_s1 + $0xf8] sm:$0xff]  ;;  %v583_v56 = vpack.c.bf16 %v164_v49, %v163_v48 }
   0xe   :  { %552 = vmatprep.subr.bf16.mxu0 %v551_v20  ;;  %576 = vmatprep.subr.bf16.mxu1 %v575_v38  ;;  %v165_v57 = vld [vmem:[%s863_s2 + $0x40] sm:$0xff]  ;;  %v166_v58 = vld [vmem:[%s863_s2 + $0x48] sm:$0xff]  ;;  %v565_v59 = vpack.c.bf16 %v49_v53, %v48_v52  ;;  %v567_v60 = vpack.c.bf16 %v67_v55, %v66_v54  ;;  %v50_v61 = vld [vmem:[%s861_s1 + $0x70] sm:$0xff] }
   0xf   :  { %v51_v62 = vld [vmem:[%s861_s1 + $0x78] sm:$0xff]  ;;  %v587_v63 = vpack.c.bf16 %v166_v58, %v165_v57  ;;  %v167_v0 = vld [vmem:[%s863_s2 + $0x50] sm:$0xff]  ;;  %v20_v3 = vld [vmem:[%s862_s0] sm:$0xff] }
  0x10   :  { %v168_v1 = vld [vmem:[%s863_s2 + $0x58] sm:$0xff]  ;;  %v569_v2 = vpack.c.bf16 %v51_v62, %v50_v61  ;;  %v28_v6 = vmax.f32 %v20_v3, 0.0  ;;  %v22_v8 = vld [vmem:[%s862_s0 + $0x10] sm:$0xff]  ;;  %v25_v9 = vld [vmem:[%s862_s0 + $0x28] sm:$0xff] }
  0x11   :  { %554 = vmatpush3.bf16.msra.mxu0 %v553_v27  ;;  %578 = vmatpush3.bf16.msra.mxu1 %v575_v38  ;;  %v23_v4 = vld [vmem:[%s862_s0 + $0x18] sm:$0xff]  ;;  %v591_v5 = vpack.c.bf16 %v168_v1, %v167_v0  ;;  %v30_v10 = vmax.f32 %v22_v8, 0.0  ;;  %v33_v11 = vmax.f32 %v25_v9, 0.0  ;;  %v24_v12 = vld [vmem:[%s862_s0 + $0x20] sm:$0xff]  ;;  %v26_v16 = vld [vmem:[%s862_s0 + $0x30] sm:$0xff] }
  0x12   :  { %556 = vmatprep.subr.bf16.mxu0 %v555_v30  ;;  %580 = vmatprep.subr.bf16.mxu1 %v579_v47  ;;  %v31_v7 = vmax.f32 %v23_v4, 0.0  ;;  %v27_v13 = vld [vmem:[%s862_s0 + $0x38] sm:$0xff]  ;;  %v32_v14 = vmax.f32 %v24_v12, 0.0  ;;  %v34_v17 = vmax.f32 %v26_v16, 0.0  ;;  %v169_v18 = vld [vmem:[%s863_s2 + $0x60] sm:$0xff]  ;;  %v170_v19 = vld [vmem:[%s863_s2 + $0x68] sm:$0xff] }
  0x13   :  { %v35_v15 = vmax.f32 %v27_v13, 0.0  ;;  %v595_v20 = vpack.c.bf16 %v170_v19, %v169_v18  ;;  %v171_v21 = vld [vmem:[%s863_s2 + $0x70] sm:$0xff]  ;;  %v172_v22 = vld [vmem:[%s863_s2 + $0x78] sm:$0xff] }
  0x14   :  { %v599_v23 = vpack.c.bf16 %v172_v22, %v171_v21 }
  0x15   :  { %558 = vmatpush3.bf16.msra.mxu0 %v557_v41  ;;  %582 = vmatpush3.bf16.msra.mxu1 %v579_v47  ;;  %v321_v41 = vld [vmem:[%s864_s3] sm:$0xff] }
  0x16   :  { %560 = vmatprep.subr.bf16.mxu0 %v559_v42  ;;  %584 = vmatprep.subr.bf16.mxu1 %v583_v56 }
  0x19   :  { %562 = vmatpush3.bf16.msra.mxu0 %v561_v50  ;;  %586 = vmatpush3.bf16.msra.mxu1 %v583_v56 }
  0x1a   :  { %564 = vmatprep.subr.bf16.mxu0 %v563_v51  ;;  %588 = vmatprep.subr.bf16.mxu1 %v587_v63 }
  0x1d   :  { %566 = vmatpush3.bf16.msra.mxu0 %v565_v59  ;;  %590 = vmatpush3.bf16.msra.mxu1 %v587_v63 }
  0x1e   :  { %568 = vmatprep.subr.bf16.mxu0 %v567_v60  ;;  %592 = vmatprep.subr.bf16.mxu1 %v591_v5 }
  0x21   :  { %570 = vmatpush3.bf16.msra.mxu0 %v569_v2  ;;  %594 = vmatpush3.bf16.msra.mxu1 %v591_v5 }
  0x22   :  { %596 = vmatprep.subr.bf16.mxu1 %v595_v20  ;;  %534 = vmatprep.subr.mxu0 %v607_v40 }
  0x24   :  { %133 = vmatmul.mubr.f32.vlgmr.msra.gmra.mrb[0].mxu0 %v28_v6 }
  0x25   :  { %137 = vmatprep.mubr.f32.mxu0 %v31_v7  ;;  %598 = vmatpush3.bf16.msra.mxu1 %v595_v20  ;;  %v310_v20 = vld [vmem:[%s865_s4 + $0x1] sm:$0x1] }
  0x26   :  { %600 = vmatprep.subr.bf16.mxu1 %v599_v23  ;;  %535 = vmatpush3.msra.mxu0 %v321_v41 }
  0x28   :  { %138 = vmatmul.mubr.f32.gmra.mrb[2].mxu0 %v30_v10 }
  0x29   :  { %142 = vmatprep.mubr.f32.mxu0 %v33_v11  ;;  %602 = vmatpush3.bf16.msra.mxu1 %v599_v23 }
  0x2c   :  { %143 = vmatmul.mubr.f32.gmra.mrb[4].mxu0 %v32_v14 }
  0x2d   :  { %147 = vmatprep.mubr.f32.mxu0 %v35_v15 }
  0x30   :  { %148 = vmatmul.mubr.f32.gmra.mrb[6].mxu0 %v34_v17  ;;  %v309_v17 = vld [vmem:[%s865_s4] sm:$0x1] }
  0x31   :  { %536 = vmatprep.mubr.msk.f32.mxu0 %vm608_vm0, %v607_v40 }
  0xf7   :  { %v452_v24 = vpop.f32.mrb[0].mxu0 }
  0xf8   :  { %v453_v25 = vpop.f32.mrb[1].mxu0 }
  0xf9   :  { %v807_v26 = vadd.f32 %v453_v25, %v452_v24  ;;  %v395_v25 = vlaneseq }
  0xfb   :  { %v455_v27 = vpop.f32.mrb[2].mxu0  ;;  %522 = vmatprep.mubr.f32.mxu1 %v807_v26  ;;  %v153_v36 = vmul.f32 %v807_v26, %v807_v26 }
  0xfc   :  { %v456_v28 = vpop.f32.mrb[3].mxu0 }
  0xfd   :  { %v810_v29 = vadd.f32 %v456_v28, %v455_v27  ;;  %v396_v27 = vshrl.u32 %v395_v25, 7 }
  0xff   :  { %v458_v30 = vpop.f32.mrb[4].mxu0  ;;  %523 = vmatmul.mubr.f32.vlgmr.msra.gmra.mrb[0].mxu1 %v810_v29  ;;  %v154_v37 = vmul.f32 %v810_v29, %v810_v29  ;;  %v397_v28 = vsub.s32 0, %v396_v27 }
 0x100   :  { %v459_v31 = vpop.f32.mrb[5].mxu0 }
 0x101   :  { %v813_v32 = vadd.f32 %v459_v31, %v458_v30  ;;  %v405_v30 = vsub.s32 1, %v396_v27 }
 0x103   :  { %v461_v33 = vpop.f32.mrb[6].mxu0  ;;  %525 = vmatprep.mubr.f32.mxu1 %v813_v32  ;;  %v155_v38 = vmul.f32 %v813_v32, %v813_v32 }
 0x104   :  { %v462_v34 = vpop.f32.mrb[7].mxu0 }
 0x105   :  { %v816_v35 = vadd.f32 %v462_v34, %v461_v33 }
 0x107   :  { %526 = vmatmul.mubr.f32.gmra.mrb[2].mxu1 %v816_v35  ;;  %v156_v39 = vmul.f32 %v816_v35, %v816_v35 }
 0x108   :  { %528 = vmatprep.mubr.f32.mxu1 %v153_v36 }
 0x10b   :  { %529 = vmatmul.mubr.f32.gmra.mrb[4].mxu1 %v154_v37 }
 0x10c   :  { %531 = vmatprep.mubr.f32.mxu1 %v155_v38 }
 0x10f   :  { %532 = vmatmul.mubr.f32.gmra.mrb[6].mxu1 %v156_v39 }
 0x1d2   :  { %v524_v42 = vpop.f32.mrb[0].mxu1 }
 0x1d3   :  { %v280_v43 = vsel %vm278_vm1, %v524_v42, 0.0  ;;  %v239_v44 = vpop.f32.mrb[1].mxu1 }
 0x1d4   :  { %v279_v45 = vsel %vm278_vm1, %v239_v44, 0.0 }
 0x1d5   :  { %v281_v46 = vadd.f32 %v280_v43, %v279_v45 }
 0x1da   :  { %v527_v47 = vpop.f32.mrb[2].mxu1 }
 0x1db   :  { %v249_v48 = vpop.f32.mrb[3].mxu1  ;;  %v284_v51 = vsel %vm278_vm1, %v527_v47, 0.0 }
 0x1dc   :  { %v282_v49 = vsel %vm278_vm1, %v249_v48, 0.0 }
 0x1dd   :  { %v283_v50 = vadd.f32 %v282_v49, %v281_v46 }
 0x1de   :  { %v530_v52 = vpop.f32.mrb[4].mxu1 }
 0x1df   :  { %v285_v53 = vadd.f32 %v284_v51, %v283_v50  ;;  %v293_v54 = vsel %vm278_vm1, %v530_v52, 0.0  ;;  %v259_v55 = vpop.f32.mrb[5].mxu1 }
 0x1e0   :  { %v292_v56 = vsel %vm278_vm1, %v259_v55, 0.0 }
 0x1e1   :  { %v286_v57 = vrot.slane %v285_v53, 4  ;;  %v294_v58 = vadd.f32 %v293_v54, %v292_v56 }
 0x1e2   :  { %v533_v59 = vpop.f32.mrb[6].mxu1 }
 0x1e3   :  { %v287_v60 = vadd.f32 %v286_v57, %v285_v53  ;;  %v269_v61 = vpop.f32.mrb[7].mxu1  ;;  %v297_v1 = vsel %vm278_vm1, %v533_v59, 0.0 }
 0x1e4   :  { %v295_v62 = vsel %vm278_vm1, %v269_v61, 0.0 }
 0x1e5   :  { %v288_v63 = vrot.slane %v287_v60, 2  ;;  %v296_v0 = vadd.f32 %v295_v62, %v294_v58 }
 0x1e7   :  { %v289_v2 = vadd.f32 %v288_v63, %v287_v60  ;;  %v298_v3 = vadd.f32 %v297_v1, %v296_v0 }
 0x1e9   :  { %v290_v4 = vrot.slane %v289_v2, 1  ;;  %v299_v5 = vrot.slane %v298_v3, 4 }
 0x1eb   :  { %v300_v6 = vadd.f32 %v299_v5, %v298_v3  ;;  %v291_v7 = vadd.f32 %v290_v4, %v289_v2 }
 0x1ed   :  { %v301_v8 = vrot.slane %v300_v6, 2  ;;  %v305_v10 = vmul.f32 0.001953125, %v291_v7 }
 0x1ef   :  { %v302_v9 = vadd.f32 %v301_v8, %v300_v6  ;;  %v307_v13 = vmul.f32 %v305_v10, %v305_v10 }
 0x1f1   :  { %v303_v11 = vrot.slane %v302_v9, 1 }
 0x1f3   :  { %v304_v12 = vadd.f32 %v303_v11, %v302_v9 }
 0x1f5   :  { %v306_v14 = vmul.f32 0.001953125, %v304_v12 }
 0x1f7   :  { %v308_v15 = vsub.f32 %v306_v14, %v307_v13 }
 0x1f9   :  { %v311_v16 = vadd.f32 1e-05, %v308_v15 }
 0x1fb   :  { %605 = vrsqrt.f32 %v311_v16 }
 0x205   :  { %v606_v18 = vpop.eup %605 }
 0x206   :  { %v313_v19 = vmul.f32 %v606_v18, %v309_v17 }
 0x208   :  { %v314_v21 = vmul.f32 %v313_v19, %v305_v10 }
 0x20a   :  { %v315_v22 = vsub.f32 %v310_v20, %v314_v21 }
 0x20c   :  { %v317_v23 = vrot.slane %v315_v22, 7 }
 0x20e   :  { %v320_v24 = vsel %vm319_vm2, %v313_v19, %v317_v23 }
 0x20f   :  { %537 = vmatmul.mubr.msk.f32.vlgmr.msra.gmra.mrb[8].mxu0 %vm278_vm1, %v320_v24 }
 0x2e2   :  { %v391_v31 = vpop.f32.mrb[8].mxu0 }
 0x2e3   :  { %v398_v33 = vrot.slane %v391_v31, %v397_v28  ;;  %v538_v34 = vpop.f32.mrb[9].mxu0  ;;  %v406_v36 = vrot.slane %v391_v31, %v405_v30 }
 0x2e5   :  { %v399_v37 = vmul.f32 %v807_v26, %v398_v33  ;;  %v400_v38 = vmul.f32 %v810_v29, %v398_v33  ;;  %v401_v39 = vmul.f32 %v813_v32, %v398_v33  ;;  %v402_v40 = vmul.f32 %v816_v35, %v398_v33 }
 0x2e7   :  { %v407_v41 = vadd.f32 %v406_v36, %v399_v37  ;;  %v408_v42 = vadd.f32 %v406_v36, %v400_v38  ;;  %v409_v43 = vadd.f32 %v406_v36, %v401_v39  ;;  %v410_v44 = vadd.f32 %v406_v36, %v402_v40 }
 0x2e9   :  { %411 = vst [vmem:[%s866_s5] sm:$0xff] %v407_v41  ;;  %412 = vst [vmem:[%s866_s5 + $0x8] sm:$0xff] %v408_v42 }
 0x2ea   :  { %413 = vst [vmem:[%s866_s5 + $0x10] sm:$0xff] %v409_v43  ;;  %414 = vst [vmem:[%s866_s5 + $0x18] sm:$0xff] %v410_v44 }

</bundles_post_ra>
